<compile_context>
chip_gen: v7x
topology: tpu7x:2x2x1
jax: 0.10.0
libtpu: 0.0.40
codegen_flags: <defaults>
</compile_context>

<pallas_src>
import math
from functools import partial

import jax
import jax.numpy as jnp
from jax.experimental import pallas as pl
from jax.experimental.pallas import tpu as pltpu

_INV_SQRT2 = 1.0 / math.sqrt(2.0)


def _gelu(h, approx):
    if approx:
        # tanh-approx GELU: tanh runs on the EUP, a separate bundle slot that
        # co-issues with MXU/VALU (perf-review item for v6e/v7x).
        return jax.nn.gelu(h, approximate=True)
    # exact erf GELU == PyTorch nn.GELU() default
    return 0.5 * h * (1.0 + jax.lax.erf(h * _INV_SQRT2))


# ---------------------------------------------------------------------------
# Kernels
# ---------------------------------------------------------------------------
def _ffn_kernel_resident(x_ref, w1_ref, b1_ref, w2_ref, b2_ref, o_ref, *, approx):
    # Weights fully VMEM-resident (single hidden step): compute and write.
    h = jnp.dot(x_ref[...], w1_ref[...], preferred_element_type=jnp.float32)
    h = _gelu(h + b1_ref[...], approx)
    o_ref[...] = (
        jnp.dot(h.astype(w2_ref.dtype), w2_ref[...],
                preferred_element_type=jnp.float32) + b2_ref[...]
    ).astype(o_ref.dtype)


def _ffn_kernel_acc_out(x_ref, w1_ref, b1_ref, w2_ref, b2_ref, o_ref, *, approx):
    # Hidden dim streamed; the f32 output tile itself is the accumulator
    # (output block index is (i, 0) for every k -> resident across k).
    k = pl.program_id(1)

    @pl.when(k == 0)
    def _():
        o_ref[...] = jnp.zeros_like(o_ref)

    h = jnp.dot(x_ref[...], w1_ref[...], preferred_element_type=jnp.float32)
    h = _gelu(h + b1_ref[...], approx)
    o_ref[...] += jnp.dot(h.astype(w2_ref.dtype), w2_ref[...],
                          preferred_element_type=jnp.float32)

    @pl.when(k == pl.num_programs(1) - 1)
    def _():
        o_ref[...] += b2_ref[...]


def _ffn_kernel_acc_scratch(x_ref, w1_ref, b1_ref, w2_ref, b2_ref, o_ref, acc_ref,
                            *, approx):
    # Hidden dim streamed, non-f32 output: accumulate in a f32 VMEM scratch.
    k = pl.program_id(1)

    @pl.when(k == 0)
    def _():
        acc_ref[...] = jnp.zeros_like(acc_ref)

    h = jnp.dot(x_ref[...], w1_ref[...], preferred_element_type=jnp.float32)
    h = _gelu(h + b1_ref[...], approx)
    acc_ref[...] += jnp.dot(h.astype(w2_ref.dtype), w2_ref[...],
                            preferred_element_type=jnp.float32)

    @pl.when(k == pl.num_programs(1) - 1)
    def _():
        o_ref[...] = (acc_ref[...] + b2_ref[...]).astype(o_ref.dtype)


# ---------------------------------------------------------------------------
# Wrapper
# ---------------------------------------------------------------------------
def _round_up(n, m):
    return (n + m - 1) // m * m


def _vmem_bytes(tm, th, E_pad, out_itemsize, use_scratch):
    b = 2 * tm * E_pad * 2                    # x tile (bf16), double-buffered
    b += 2 * (E_pad * th + th * E_pad) * 2    # W1 + W2 slices (bf16), 2 buffers
    b += 2 * 8 * th * 4 + 2 * 8 * E_pad * 4   # biases (sublane-padded f32)
    b += 2 * tm * E_pad * out_itemsize        # output tile
    b += tm * th * 4                          # GELU intermediate (f32)
    if use_scratch:
        b += tm * E_pad * 4                   # f32 accumulator scratch
    return b


@partial(jax.jit, static_argnames=("tm", "th", "approx_gelu"))
def feed_forward(x, w1, b1, w2, b2, tm=512, th=None, approx_gelu=False):
    """x: (B, S, E). Weights stored (in, out): w1 (E,H), w2 (H,E). Dropout = eval."""
    B, S, E = x.shape
    H = w1.shape[1]
    R = B * S
    out_dtype = x.dtype
    out_itemsize = jnp.dtype(out_dtype).itemsize
    out_is_f32 = jnp.dtype(out_dtype) == jnp.float32

    # --- VMEM budget: cap well below physical (matters on v7x's 64 MiB/TC) ---
    try:
        vmem_cap = int(pltpu.get_tpu_info().vmem_capacity_bytes)
    except Exception:
        vmem_cap = 128 << 20
    budget = min(vmem_cap * 3 // 4, 96 << 20)
    headroom = 4 << 20

    # --- tile sizes -----------------------------------------------------------
    E_pad = _round_up(E, 128)
    H_full = _round_up(H, 128)

    # Row tile: streamed-weight arithmetic intensity ~ tm flop/byte, so default
    # 512 to reach v6e/v7x machine balance.  Clamp for small R (bf16 sublane=16).
    tm = _round_up(max(16, min(tm, _round_up(R, 16))), 16)
    R_pad = _round_up(R, tm)
    # Megacore (v7x): prefer >= 2 row tiles so both TensorCores get work.
    while R_pad // tm < 2 and tm > 256:
        tm = _round_up(max(16, tm // 2), 16)
        R_pad = _round_up(R, tm)

    if th is None:
        # Biggest win: make weights fully VMEM-resident when they fit so W1/W2
        # are DMA'd once for the whole kernel instead of once per row tile.
        if _vmem_bytes(tm, H_full, E_pad, out_itemsize, False) + headroom <= budget:
            th = H_full
        else:
            th = 2048
            while th > 256 and (_vmem_bytes(tm, th, E_pad, out_itemsize,
                                            not out_is_f32) + headroom > budget):
                th //= 2
    th = _round_up(max(128, min(th, H_full)), 128)
    H_pad = _round_up(H, th)
    grid_k = H_pad // th
    n_row_tiles = R_pad // tm

    # One-time casts / zero-padding in the wrapper (not per grid step).
    # Padding is mathematically exact: padded hidden cols hit zero W2 rows, and
    # padded E cols / padded rows are sliced off below (robust even if the
    # activation were changed to one with f(0) != 0).
    x2 = jnp.pad(x.reshape(R, E), ((0, R_pad - R), (0, E_pad - E))).astype(jnp.bfloat16)
    w1p = jnp.pad(w1, ((0, E_pad - E), (0, H_pad - H))).astype(jnp.bfloat16)
    w2p = jnp.pad(w2, ((0, H_pad - H), (0, E_pad - E))).astype(jnp.bfloat16)
    b1p = jnp.pad(b1, (0, H_pad - H)).reshape(1, H_pad).astype(jnp.float32)
    b2p = jnp.pad(b2, (0, E_pad - E)).reshape(1, E_pad).astype(jnp.float32)

    use_scratch = (grid_k > 1) and (not out_is_f32)
    est = _vmem_bytes(tm, th, E_pad, out_itemsize, use_scratch)
    vmem_limit = int(min(max(est + headroom, 32 << 20), budget))

    # Weight bytes are re-streamed once per row tile when the hidden dim is
    # tiled; only once when resident.
    w_stream = 1 if grid_k == 1 else n_row_tiles
    cost = pl.CostEstimate(
        flops=4 * R_pad * E_pad * H_pad,            # two matmuls
        transcendentals=R_pad * H_pad,              # erf / tanh
        bytes_accessed=(x2.size * 2
                        + w_stream * (w1p.size * 2 + w2p.size * 2)
                        + b1p.size * 4 + b2p.size * 4
                        + R_pad * E_pad * out_itemsize),
    )

    if grid_k == 1:
        # Resident-weight path: constant weight index maps -> DMA'd once.
        grid = (n_row_tiles,)
        in_specs = [
            pl.BlockSpec((tm, E_pad), lambda i: (i, 0)),   # x rows
            pl.BlockSpec((E_pad, th), lambda i: (0, 0)),   # W1 (resident)
            pl.BlockSpec((1, th),     lambda i: (0, 0)),   # b1
            pl.BlockSpec((th, E_pad), lambda i: (0, 0)),   # W2 (resident)
            pl.BlockSpec((1, E_pad),  lambda i: (0, 0)),   # b2
        ]
        out_spec = pl.BlockSpec((tm, E_pad), lambda i: (i, 0))
        kernel = partial(_ffn_kernel_resident, approx=approx_gelu)
        scratch = []
        dims = ("parallel",)
    else:
        grid = (n_row_tiles, grid_k)
        in_specs = [
            pl.BlockSpec((tm, E_pad), lambda i, k: (i, 0)),   # x rows
            pl.BlockSpec((E_pad, th), lambda i, k: (0, k)),   # W1 slice
            pl.BlockSpec((1, th),     lambda i, k: (0, k)),   # b1 slice
            pl.BlockSpec((th, E_pad), lambda i, k: (k, 0)),   # W2 slice
            pl.BlockSpec((1, E_pad),  lambda i, k: (0, 0)),   # b2
        ]
        out_spec = pl.BlockSpec((tm, E_pad), lambda i, k: (i, 0))
        if out_is_f32:
            kernel = partial(_ffn_kernel_acc_out, approx=approx_gelu)
            scratch = []
        else:
            kernel = partial(_ffn_kernel_acc_scratch, approx=approx_gelu)
            scratch = [pltpu.VMEM((tm, E_pad), jnp.float32)]
        dims = ("parallel", "arbitrary")
        # TODO(synk): on v5e, consider pipeline_mode=pl.Buffered(3) on the W1/W2
        # specs to hide the longer HBM fetch at ~0.8 TB/s.

    out = pl.pallas_call(
        kernel,
        out_shape=jax.ShapeDtypeStruct((R_pad, E_pad), out_dtype),
        grid_spec=pltpu.PrefetchScalarGridSpec(
            num_scalar_prefetch=0,
            grid=grid,
            in_specs=in_specs,
            out_specs=out_spec,
            scratch_shapes=scratch,
        ),
        compiler_params=pltpu.CompilerParams(
            dimension_semantics=dims,
            vmem_limit_bytes=vmem_limit,
        ),
        cost_estimate=cost,
    )(x2, w1p, b1p, w2p, b2p)

    return out[:R, :E].reshape(B, S, E)


def init_params(key, embed_dim, hidden_dim):
    """Deterministic PyTorch-style Linear init (uniform +/- 1/sqrt(fan_in))."""
    k1, k2, k3, k4 = jax.random.split(key, 4)
    bound1 = 1.0 / math.sqrt(embed_dim)
    bound2 = 1.0 / math.sqrt(hidden_dim)
    # stored transposed relative to PyTorch: (in, out)
    w1 = jax.random.uniform(k1, (embed_dim, hidden_dim), jnp.float32, -bound1, bound1)
    b1 = jax.random.uniform(k2, (hidden_dim,), jnp.float32, -bound1, bound1)
    w2 = jax.random.uniform(k3, (hidden_dim, embed_dim), jnp.float32, -bound2, bound2)
    b2 = jax.random.uniform(k4, (embed_dim,), jnp.float32, -bound2, bound2)
    return w1, b1, w2, b2


if __name__ == "__main__":
    key = jax.random.PRNGKey(0)
    kx, kp = jax.random.split(key)

    # Small but lane-dense demo shapes (E, H multiples of 128).
    batch, seq, embed_dim, hidden_dim = 2, 8, 128, 256
    x = jax.random.normal(kx, (batch, seq, embed_dim), jnp.float32)
    w1, b1, w2, b2 = init_params(kp, embed_dim, hidden_dim)

    # Reference in plain f32 JAX (exact erf GELU, dropout = identity in eval).
    h_ref = x.reshape(-1, embed_dim) @ w1 + b1
    h_ref = 0.5 * h_ref * (1.0 + jax.lax.erf(h_ref / math.sqrt(2.0)))
    y_ref = (h_ref @ w2 + b2).reshape(batch, seq, embed_dim)

    # Resident-weights path (weights DMA'd once, single hidden step).
    y = feed_forward(x, w1, b1, w2, b2)
    jax.block_until_ready(y)
    assert jnp.allclose(y, y_ref, atol=3e-2, rtol=3e-2), "resident path mismatch"

    # Hidden-streamed path (exercises accumulate-into-output kernel).
    y2 = feed_forward(x, w1, b1, w2, b2, th=128)
    jax.block_until_ready(y2)
    assert jnp.allclose(y2, y_ref, atol=3e-2, rtol=3e-2), "streamed path mismatch"

    print("KERNEL_OK")
</pallas_src>

<mosaic_0001>
module attributes {stable_mosaic.version = 11 : i64} {
  func.func @_ffn_kernel_resident(%arg0: i32, %arg1: memref<16x128xbf16, #tpu.memory_space<vmem>>, %arg2: memref<128x256xbf16, #tpu.memory_space<vmem>>, %arg3: memref<1x256xf32, #tpu.memory_space<vmem>>, %arg4: memref<256x128xbf16, #tpu.memory_space<vmem>>, %arg5: memref<1x128xf32, #tpu.memory_space<vmem>>, %arg6: memref<16x128xf32, #tpu.memory_space<vmem>>) attributes {dimension_semantics = [#tpu.dimension_semantics<parallel>], iteration_bounds = array<i64: 1>, scalar_prefetch = 0 : i64, scratch_operands = 0 : i64, tpu.core_type = #tpu.core_type<tc>, window_params = [{transform_indices = @transform_0, window_bounds = array<i64: 16, 128>}, {pipeline_mode = #tpu.pipeline_mode<synchronous>, transform_indices = @transform_1, window_bounds = array<i64: 128, 256>}, {pipeline_mode = #tpu.pipeline_mode<synchronous>, transform_indices = @transform_2, window_bounds = array<i64: 1, 256>}, {pipeline_mode = #tpu.pipeline_mode<synchronous>, transform_indices = @transform_3, window_bounds = array<i64: 256, 128>}, {pipeline_mode = #tpu.pipeline_mode<synchronous>, transform_indices = @transform_4, window_bounds = array<i64: 1, 128>}, {transform_indices = @transform_5, window_bounds = array<i64: 16, 128>}]} {
    %c0 = arith.constant 0 : index
    %c0_0 = arith.constant 0 : index
    %0 = vector.load %arg1[%c0, %c0_0] : memref<16x128xbf16, #tpu.memory_space<vmem>>, vector<16x128xbf16>
    %c0_1 = arith.constant 0 : index
    %c0_2 = arith.constant 0 : index
    %1 = vector.load %arg2[%c0_1, %c0_2] : memref<128x256xbf16, #tpu.memory_space<vmem>>, vector<128x256xbf16>
    %cst = arith.constant dense<0.000000e+00> : vector<16x256xf32>
    %2 = tpu.matmul %0, %1, %cst {dimension_numbers = #tpu.dot_dimension_numbers<[1], [0], [0], [1], [0, 0, 1, 1], [], []>} : vector<16x128xbf16>, vector<128x256xbf16>, vector<16x256xf32> -> vector<16x256xf32>
    %c0_3 = arith.constant 0 : index
    %c0_4 = arith.constant 0 : index
    %3 = vector.load %arg3[%c0_3, %c0_4] : memref<1x256xf32, #tpu.memory_space<vmem>>, vector<1x256xf32>
    %4 = vector.broadcast %3 : vector<1x256xf32> to vector<16x256xf32>
    %5 = arith.addf %2, %4 : vector<16x256xf32>
    %cst_5 = arith.constant 5.000000e-01 : f32
    %6 = vector.broadcast %cst_5 : f32 to vector<16x256xf32>
    %7 = arith.mulf %6, %5 : vector<16x256xf32>
    %cst_6 = arith.constant 0.707106769 : f32
    %8 = vector.broadcast %cst_6 : f32 to vector<16x256xf32>
    %9 = arith.mulf %5, %8 : vector<16x256xf32>
    %10 = math.erf %9 : vector<16x256xf32>
    %cst_7 = arith.constant 1.000000e+00 : f32
    %11 = vector.broadcast %cst_7 : f32 to vector<16x256xf32>
    %12 = arith.addf %11, %10 : vector<16x256xf32>
    %13 = arith.mulf %7, %12 : vector<16x256xf32>
    %14 = arith.truncf %13 : vector<16x256xf32> to vector<16x256xbf16>
    %c0_8 = arith.constant 0 : index
    %c0_9 = arith.constant 0 : index
    %15 = vector.load %arg4[%c0_8, %c0_9] : memref<256x128xbf16, #tpu.memory_space<vmem>>, vector<256x128xbf16>
    %cst_10 = arith.constant dense<0.000000e+00> : vector<16x128xf32>
    %16 = tpu.matmul %14, %15, %cst_10 {dimension_numbers = #tpu.dot_dimension_numbers<[1], [0], [0], [1], [0, 0, 1, 1], [], []>} : vector<16x256xbf16>, vector<256x128xbf16>, vector<16x128xf32> -> vector<16x128xf32>
    %c0_11 = arith.constant 0 : index
    %c0_12 = arith.constant 0 : index
    %17 = vector.load %arg5[%c0_11, %c0_12] : memref<1x128xf32, #tpu.memory_space<vmem>>, vector<1x128xf32>
    %18 = vector.broadcast %17 : vector<1x128xf32> to vector<16x128xf32>
    %19 = arith.addf %16, %18 : vector<16x128xf32>
    %c0_13 = arith.constant 0 : index
    %c0_14 = arith.constant 0 : index
    %20 = vector.load %arg6[%c0_13, %c0_14] : memref<16x128xf32, #tpu.memory_space<vmem>>, vector<16x128xf32>
    tpu.vector_store %arg6[%c0_13, %c0_14], %19 {strides = array<i32>} : memref<16x128xf32, #tpu.memory_space<vmem>>, vector<16x128xf32>,
    return
  }
  func.func @transform_0(%arg0: i32) -> (i32, i32) {
    %c0_i32 = arith.constant 0 : i32
    %c0_i32_0 = arith.constant 0 : i32
    return %arg0, %c0_i32 : i32, i32
  }
  func.func @transform_1(%arg0: i32) -> (i32, i32) {
    %c0_i32 = arith.constant 0 : i32
    %c0_i32_0 = arith.constant 0 : i32
    %c0_i32_1 = arith.constant 0 : i32
    return %c0_i32, %c0_i32_0 : i32, i32
  }
  func.func @transform_2(%arg0: i32) -> (i32, i32) {
    %c0_i32 = arith.constant 0 : i32
    %c0_i32_0 = arith.constant 0 : i32
    %c0_i32_1 = arith.constant 0 : i32
    return %c0_i32, %c0_i32_0 : i32, i32
  }
  func.func @transform_3(%arg0: i32) -> (i32, i32) {
    %c0_i32 = arith.constant 0 : i32
    %c0_i32_0 = arith.constant 0 : i32
    %c0_i32_1 = arith.constant 0 : i32
    return %c0_i32, %c0_i32_0 : i32, i32
  }
  func.func @transform_4(%arg0: i32) -> (i32, i32) {
    %c0_i32 = arith.constant 0 : i32
    %c0_i32_0 = arith.constant 0 : i32
    %c0_i32_1 = arith.constant 0 : i32
    return %c0_i32, %c0_i32_0 : i32, i32
  }
  func.func @transform_5(%arg0: i32) -> (i32, i32) {
    %c0_i32 = arith.constant 0 : i32
    %c0_i32_0 = arith.constant 0 : i32
    return %arg0, %c0_i32 : i32, i32
  }
}

</mosaic_0001>

<bundles_post_ra>
// kernel: feed_forward.1
= control target key start
LH: loop header
LB: loop body
LE: loop exit
PB: predicated region body
PF: predicated region fallthrough
CT: control target
= control target key end

     0   :  { %v530_v2 = vmov 0   ;;  %s681_s0 = inlined_call_operand.vmem [shape: bf16[16,128], index: 0, kind: input, shape index: {}]   ;;  %s682_s1 = inlined_call_operand.vmem [shape: bf16[128,256], index: 1, kind: input, shape index: {}]   ;;  %s683_s2 = inlined_call_operand.vmem [shape: f32[1,256], index: 2, kind: input, shape index: {}]   ;;  %s684_s3 = inlined_call_operand.vmem [shape: bf16[256,128], index: 3, kind: input, shape index: {}]   ;;  %s685_s4 = inlined_call_operand.vmem [shape: f32[1,128], index: 4, kind: input, shape index: {}]   ;;  %s686_s5 = inlined_call_operand.hbm [shape: f32[16,128], index: 5, kind: output, shape index: {}]  }
   0x1   :  { %v457_v0 = vld [vmem:[%s682_s1 + $0x4] ss:$8 sps:$4 sm:$0xff]   ;;  %v459_v1 = vld [vmem:[%s682_s1] ss:$8 sps:$4 sm:$0xff]   ;;  %170 = vmatprep.mubr.bf16.mxu0 %v530_v2  ;;  %v460_v3 = vld [vmem:[%s682_s1 + $0x14] ss:$8 sps:$4 sm:$0xff]  }
   0x2   :  { %138 = vmatprep.subr.bf16.mxu0 %v457_v0  ;;  %v462_v4 = vld [vmem:[%s682_s1 + $0x10] ss:$8 sps:$4 sm:$0xff]   ;;  %v463_v5 = vld [vmem:[%s682_s1 + $0x24] ss:$8 sps:$4 sm:$0xff]   ;;  %v465_v6 = vld [vmem:[%s682_s1 + $0x20] ss:$8 sps:$4 sm:$0xff]  }
   0x3   :  { %139 = vmatpush1.bf16.msra.mxu0 %v459_v1  ;;  %v466_v7 = vld [vmem:[%s682_s1 + $0x34] ss:$8 sps:$4 sm:$0xff]   ;;  %v468_v8 = vld [vmem:[%s682_s1 + $0x30] ss:$8 sps:$4 sm:$0xff]   ;;  %v469_v9 = vld [vmem:[%s682_s1 + $0x44] ss:$8 sps:$4 sm:$0xff]  }
   0x4   :  { %140 = vmatprep.subr.bf16.mxu0 %v460_v3  ;;  %v482_v10 = vld [vmem:[%s684_s3 + $0x40] sm:$0xff]   ;;  %v484_v13 = vld [vmem:[%s684_s3 + $0x48] sm:$0xff]   ;;  %v472_v14 = vld [vmem:[%s682_s1 + $0x54] ss:$8 sps:$4 sm:$0xff]  }
   0x5   :  { %v471_v11 = vld [vmem:[%s682_s1 + $0x40] ss:$8 sps:$4 sm:$0xff]   ;;  %431 = vmatprep.subr.bf16.mxu1 %v482_v10  ;;  %v474_v16 = vld [vmem:[%s682_s1 + $0x50] ss:$8 sps:$4 sm:$0xff]   ;;  %v475_v17 = vld [vmem:[%s682_s1 + $0x64] ss:$8 sps:$4 sm:$0xff]  }
   0x6   :  { %v483_v12 = vld [vmem:[%s684_s3] sm:$0xff]   ;;  %v485_v15 = vld [vmem:[%s684_s3 + $0x8] sm:$0xff]   ;;  %v478_v19 = vld [vmem:[%s682_s1 + $0x74] ss:$8 sps:$4 sm:$0xff]  }
   0x7   :  { %141 = vmatpush1.bf16.msra.mxu0 %v462_v4  ;;  %432 = vmatpush3.bf16.msra.mxu1 %v483_v12  ;;  %v477_v18 = vld [vmem:[%s682_s1 + $0x60] ss:$8 sps:$4 sm:$0xff]  }
   0x8   :  { %142 = vmatprep.subr.bf16.mxu0 %v463_v5  ;;  %433 = vmatprep.subr.bf16.mxu1 %v484_v13 }
   0xb   :  { %143 = vmatpush1.bf16.msra.mxu0 %v465_v6  ;;  %434 = vmatpush3.bf16.msra.mxu1 %v485_v15 }
   0xc   :  { %144 = vmatprep.subr.bf16.mxu0 %v466_v7 }
   0xf   :  { %145 = vmatpush1.bf16.msra.mxu0 %v468_v8 }
  0x10   :  { %146 = vmatprep.subr.bf16.mxu0 %v469_v9 }
  0x13   :  { %147 = vmatpush1.bf16.msra.mxu0 %v471_v11 }
  0x14   :  { %148 = vmatprep.subr.bf16.mxu0 %v472_v14 }
  0x17   :  { %149 = vmatpush1.bf16.msra.mxu0 %v474_v16 }
  0x18   :  { %150 = vmatprep.subr.bf16.mxu0 %v475_v17 }
  0x19   :  { %10 = vsyncpa [#allocation3], 0  ;;  %v480_v20 = vld [vmem:[%s682_s1 + $0x70] ss:$8 sps:$4 sm:$0xff]   ;;  %v481_v21 = vld [vmem:[%s681_s0] sm:$0xff]   ;;  %v42_v34 = vlaneseq  ;;  %s531_s9 = smov [#allocation2]  }
  0x1a   :  { %v486_v22 = vld [vmem:[%s684_s3 + $0x50] sm:$0xff]   ;;  %v488_v24 = vld [vmem:[%s684_s3 + $0x58] sm:$0xff]   ;;  %v490_v26 = vld [vmem:[%s684_s3 + $0x60] sm:$0xff]   ;;  %s386_s10 = sshll.u32 %s531_s9, 4  ;;  %s387_s10 = int_to_ptr.vmem [resolvable:$true] %s386_s10 }
  0x1b   :  { %151 = vmatpush1.bf16.msra.mxu0 %v477_v18  ;;  %v487_v23 = vld [vmem:[%s684_s3 + $0x10] sm:$0xff]   ;;  %435 = vmatprep.subr.bf16.mxu1 %v486_v22  ;;  %v489_v25 = vld [vmem:[%s684_s3 + $0x18] sm:$0xff]   ;;  %v491_v27 = vld [vmem:[%s684_s3 + $0x20] sm:$0xff]   ;;  %v43_v35 = vshrl.u32 %v42_v34, 7  ;;  %s506_s11 = scalar_lea.vmem %s387_s10, 256  ;;  %p511_p1 = scmp.lt.s32.totalorder %s387_s10, %s387_s10 }
  0x1c   :  { %152 = vmatprep.subr.bf16.mxu0 %v478_v19  ;;  %436 = vmatpush3.bf16.msra.mxu1 %v487_v23  ;;  %v492_v28 = vld [vmem:[%s684_s3 + $0x68] sm:$0xff]   ;;  %v494_v30 = vld [vmem:[%s684_s3 + $0x70] sm:$0xff]   ;;  %v496_v32 = vld [vmem:[%s684_s3 + $0x78] sm:$0xff]   ;;  %p507_p0 = scmp.ne.s32.totalorder %s387_s10, %s506_s11  ;;  %p512_p2 = scmp.lt.s32.totalorder %s506_s11, %s506_s11 }
  0x1d   :  { %437 = vmatprep.subr.bf16.mxu1 %v488_v24  ;;  %v493_v29 = vld [vmem:[%s684_s3 + $0x28] sm:$0xff]   ;;  %v495_v31 = vld [vmem:[%s684_s3 + $0x30] sm:$0xff]   ;;  %v497_v33 = vld [vmem:[%s684_s3 + $0x38] sm:$0xff]   ;;  %v44_v36 = vsub.s32 0, %v43_v35  ;;  %v48_v38 = vsub.s32 1, %v43_v35 }
  0x1e   :  { %v40_v37 = vld [vmem:[%s683_s2] sm:$0x3]  ;;  %p513_p3 = por %p512_p2, %p511_p1 }
  0x1f   :  { %153 = vmatpush1.bf16.msra.mxu0 %v480_v20  ;;  %v45_v39 = vrot.slane %v40_v37, %v44_v36  ;;  %v49_v40 = vrot.slane %v40_v37, %v48_v38  ;;  %v414_v8 = vld [vmem:[%s685_s4] ss:$0 sm:$0xff] }
  0x20   :  { %438 = vmatpush3.bf16.msra.mxu1 %v489_v25  ;;  %p514_p4 = pnand %p513_p3, %p507_p0 }
  0x21   :  { %439 = vmatprep.subr.bf16.mxu1 %v490_v26 }
  0x22   :  { %171 = vmatmul.mubr.bf16.vlgmr.msra.gmra.mrb[0].mxu0 %v481_v21 }
  0x24   :  { %440 = vmatpush3.bf16.msra.mxu1 %v491_v27 }
  0x25   :  { %441 = vmatprep.subr.bf16.mxu1 %v492_v28 }
  0x28   :  { %442 = vmatpush3.bf16.msra.mxu1 %v493_v29 }
  0x29   :  { %443 = vmatprep.subr.bf16.mxu1 %v494_v30 }
  0x2c   :  { %444 = vmatpush3.bf16.msra.mxu1 %v495_v31 }
  0x2d   :  { %445 = vmatprep.subr.bf16.mxu1 %v496_v32 }
  0x30   :  { %446 = vmatpush3.bf16.msra.mxu1 %v497_v33 }
  0xf5   :  { %v172_v41 = vpop.f32.mrb[0].mxu0 }
  0xf6   :  { %v173_v42 = vadd.f32 %v172_v41, %v45_v39  ;;  %v174_v43 = vpop.f32.mrb[1].mxu0 }
  0xf7   :  { %v175_v44 = vadd.f32 %v174_v43, %v49_v40  ;;  %v176_v45 = vpop.f32.mrb[2].mxu0 }
  0xf8   :  { %v185_v46 = vmul.f32 0.70710677, %v173_v42  ;;  %v177_v47 = vadd.f32 %v176_v45, %v45_v39  ;;  %v178_v48 = vpop.f32.mrb[3].mxu0  ;;  %v181_v59 = vmul.f32 0.5, %v173_v42 }
  0xf9   :  { %v186_v49 = vmul.f32 0.70710677, %v175_v44  ;;  %v179_v50 = vadd.f32 %v178_v48, %v49_v40  ;;  %v182_v62 = vmul.f32 0.5, %v175_v44 }
  0xfa   :  { %498 = verf.f32 %v185_v46  ;;  %v187_v51 = vmul.f32 0.70710677, %v177_v47  ;;  %v183_v60 = vmul.f32 0.5, %v177_v47 }
  0xfb   :  { %500 = verf.f32 %v186_v49  ;;  %v188_v52 = vmul.f32 0.70710677, %v179_v50  ;;  %v184_v63 = vmul.f32 0.5, %v179_v50 }
  0xfc   :  { %502 = verf.f32 %v187_v51 }
  0xfd   :  { %504 = verf.f32 %v188_v52 }
 0x104   :  { %v499_v53 = vpop.eup %498 }
 0x105   :  { %v501_v54 = vpop.eup %500  ;;  %v193_v55 = vadd.f32 1.0, %v499_v53 }
 0x106   :  { %v503_v56 = vpop.eup %502  ;;  %v194_v57 = vadd.f32 1.0, %v501_v54 }
 0x107   :  { %v505_v58 = vpop.eup %504  ;;  %v195_v61 = vadd.f32 1.0, %v503_v56  ;;  %v197_v1 = vmul.f32 %v193_v55, %v181_v59 }
 0x108   :  { %v196_v0 = vadd.f32 1.0, %v505_v58  ;;  %v198_v3 = vmul.f32 %v194_v57, %v182_v62 }
 0x109   :  { %v199_v2 = vmul.f32 %v195_v61, %v183_v60 }
 0x10a   :  { %v200_v4 = vmul.f32 %v196_v0, %v184_v63 }
 0x10b   :  { %v201_v5 = vpack.c.bf16 %v199_v2, %v197_v1 }
 0x10c   :  { %v202_v6 = vpack.c.bf16 %v200_v4, %v198_v3 }
 0x10e   :  { %370 = vmatprep.mubr.bf16.mxu1 %v202_v6 }
 0x10f   :  { %371 = vmatmul.mubr.bf16.vlgmr.msra.gmra.mrb[0].mxu1 %v201_v5 }
 0x1e2   :  { %v447_v7 = vpop.f32.mrb[0].mxu1 }
 0x1e3   :  { %v448_v9 = vpop.f32.mrb[1].mxu1 }
 0x1e4   :  { %v449_v10 = vadd.f32 %v448_v9, %v447_v7  ;;  %v450_v11 = vpop.f32.mrb[2].mxu1 }
 0x1e5   :  { %v451_v12 = vpop.f32.mrb[3].mxu1 }
 0x1e6   :  { %v373_v13 = vadd.f32 %v449_v10, %v414_v8  ;;  %v452_v14 = vadd.f32 %v451_v12, %v450_v11 }
 0x1e8   :  { %379 = vst [vmem:[#allocation2] sm:$0xff] %v373_v13  ;;  %v376_v15 = vadd.f32 %v452_v14, %v414_v8 }
 0x1ea   :  { %380 = vst [vmem:[#allocation2 + $0x8] sm:$0xff] %v376_v15 }
 0x1eb   :  { %517 = shalt.err (!%p514_p4)
}
 0x1ec   :  { %s518_s13 = scalar_lea.hbm %s686_s5, 256 }
 0x1ed   :  { %p519_p5 = scmp.ne.s32.totalorder %s686_s5, %s518_s13  ;;  %p522_p6 = scmp.lt.u32.totalorder %s518_s13, %s686_s5 }
 0x1ef   :  { %p524_p7 = pnand %p522_p6, %p519_p5 }
 0x1f1   :  { %527 = shalt.err (!%p524_p7)
}
 0x1f2   :  { %s532_s0 = smov 128   ;;  %s533_s17 = smov 8  }
 0x1f3   :  { %392 = dma.vmem_to_hbm [thread:$0]  %s387_s10, 256, %s686_s5, [#allocation3], %s532_s0, %s532_s0, %s533_s17  }
 0x1f4   :  { %528 = dma.done.wait [#allocation3], 256  }
 0x1f5   :  { %529 = vsyncadd [#allocation3], 4294967040 }
 0x1f6   :  { %396 = vsyncpa [#allocation3], 1 }

</bundles_post_ra>
